<compile_context>
chip_gen: v7x
topology: tpu7x:2x2x1
jax: 0.10.0
libtpu: 0.0.40
codegen_flags: <defaults>
</compile_context>

<pallas_src>
import jax
import jax.numpy as jnp
from jax.experimental import pallas as pl
from jax.experimental.pallas import tpu as pltpu

_LANE = 128


def _copy_kernel(x_ref, o_ref):
    # Straight copy of the current (block_rows, L) tile.
    o_ref[...] = x_ref[...]


def _sublane_rows(dtype):
    # Sub-32-bit dtypes pack along sublanes: f32 -> 8, bf16 -> 16, int8/fp8 -> 32.
    itemsize = jnp.dtype(dtype).itemsize
    return max(8, 32 // max(int(itemsize), 1))


def _vmem_capacity_bytes():
    try:
        return int(pltpu.get_tpu_info().vmem_capacity_bytes)
    except Exception:
        return 64 * 1024 * 1024  # conservative (v7x physical)


def _num_tensorcores():
    # v7x has 2 TensorCores per chip; v5e/v6e have 1.  Detect conservatively
    # from the device kind string; default to 1 (no grid split = no per-step
    # overhead on single-TC chips).
    try:
        kind = str(jax.devices()[0].device_kind).lower()
        if "v7" in kind or "7x" in kind:
            return 2
    except Exception:
        pass
    return 1


def flatten_pallas(x, force_copy_kernel=False):
    """torch Flatten: x.view(x.size(0), -1).

    Default: metadata-only reshape (exact, zero HBM traffic).
    force_copy_kernel=True: exercise a lane-dense Pallas copy of the data.
    """
    n = x.shape[0]
    f = 1
    for d in x.shape[1:]:
        f *= d
    x2d = x.reshape(n, f)  # metadata-only; identical to torch .view

    if not force_copy_kernel:
        return x2d

    total = n * f
    itemsize = int(jnp.dtype(x.dtype).itemsize)
    sublane = _sublane_rows(x.dtype)

    # Non-lane-divisible or empty totals: the exact, fastest implementation is
    # the reshape itself (avoids masked vst.msk partial stores entirely).
    if total == 0 or total % _LANE != 0:
        return x2d

    # ---- lane-dense flat view (rows, L): largest L whose row count is also
    # sublane-dense for this dtype; otherwise just the largest dividing L.
    candidates = (8192, 4096, 2048, 1024, 512, 256, 128)
    L = None
    for cand in candidates:
        if total % cand == 0 and (total // cand) % sublane == 0:
            L = cand
            break
    if L is None:
        for cand in candidates:
            if total % cand == 0:
                L = cand
                break
    rows = total // L
    flat = x2d.reshape(rows, L)  # metadata-only; same row-major order

    # ---- block sizing: ~cap/16 bytes per buffer (2 in + 2 out double buffers
    # => peak ~cap/4), rounded down to a sublane multiple of rows.
    cap = _vmem_capacity_bytes()
    per_buf = max(cap // 16, 1 << 20)
    max_block_rows = max((per_buf // (L * itemsize)) // sublane * sublane, sublane)

    if rows <= max_block_rows:
        block_rows = rows          # full extent: valid even if not 8-aligned
    else:
        block_rows = max_block_rows  # sublane multiple; cdiv grid handles tail

    # Multi-TensorCore chips (v7x): target >= 2 grid steps per core so each
    # core's input prefetch overlaps its writeback.  Single-TC chips skip this.
    min_steps = 4 if _num_tensorcores() >= 2 else 1
    if min_steps > 1 and rows >= min_steps * sublane:
        per_step = -(-rows // min_steps)  # ceil
        target = max(sublane, (per_step // sublane) * sublane)
        block_rows = min(block_rows, target)

    grid = (pl.cdiv(rows, block_rows),)
    block_bytes = block_rows * L * itemsize
    vmem_limit = int(min(max(5 * block_bytes, 16 * 1024 * 1024), cap // 2))

    out_flat = pl.pallas_call(
        _copy_kernel,
        out_shape=jax.ShapeDtypeStruct((rows, L), x.dtype),
        grid_spec=pltpu.PrefetchScalarGridSpec(
            num_scalar_prefetch=0,
            grid=grid,
            in_specs=[pl.BlockSpec((block_rows, L), lambda i: (i, 0))],
            out_specs=pl.BlockSpec((block_rows, L), lambda i: (i, 0)),
        ),
        compiler_params=pltpu.CompilerParams(
            dimension_semantics=("parallel",),
            vmem_limit_bytes=vmem_limit,
        ),
        cost_estimate=pl.CostEstimate(
            flops=0, transcendentals=0, bytes_accessed=2 * total * itemsize
        ),
    )(flat)

    # Metadata-only reshape back to (N, F).
    return out_flat.reshape(n, f)


if __name__ == "__main__":
    key = jax.random.PRNGKey(0)
    # Small NCHW input consistent with typical usage of Flatten after convs.
    x = jax.random.normal(key, (2, 4, 16, 16), dtype=jnp.float32)

    y_ref = x.reshape(x.shape[0], -1)  # == torch .view semantics

    # Production path: metadata-only flatten.
    y_fast = flatten_pallas(x)
    jax.block_until_ready(y_fast)

    # Benchmark/debug path: exercise the Pallas copy kernel once.
    y_kernel = flatten_pallas(x, force_copy_kernel=True)
    jax.block_until_ready(y_kernel)

    assert y_fast.shape == (2, 4 * 16 * 16), y_fast.shape
    assert y_kernel.shape == (2, 4 * 16 * 16), y_kernel.shape
    assert y_fast.dtype == x.dtype and y_kernel.dtype == x.dtype
    assert jnp.array_equal(y_fast, y_ref), "mismatch vs reference flatten (fast path)"
    assert jnp.array_equal(y_kernel, y_ref), "mismatch vs reference flatten (kernel path)"

    print("KERNEL_OK")
</pallas_src>

<mosaic_0001>
module attributes {stable_mosaic.version = 11 : i64} {
  func.func @_copy_kernel(%arg0: i32, %arg1: memref<8x256xf32, #tpu.memory_space<vmem>>, %arg2: memref<8x256xf32, #tpu.memory_space<vmem>>) attributes {dimension_semantics = [#tpu.dimension_semantics<parallel>], iteration_bounds = array<i64: 1>, scalar_prefetch = 0 : i64, scratch_operands = 0 : i64, tpu.core_type = #tpu.core_type<tc>, window_params = [{transform_indices = @transform_0, window_bounds = array<i64: 8, 256>}, {transform_indices = @transform_1, window_bounds = array<i64: 8, 256>}]} {
    %c0 = arith.constant 0 : index
    %c0_0 = arith.constant 0 : index
    %0 = vector.load %arg1[%c0, %c0_0] : memref<8x256xf32, #tpu.memory_space<vmem>>, vector<8x256xf32>
    %c0_1 = arith.constant 0 : index
    %c0_2 = arith.constant 0 : index
    %1 = vector.load %arg2[%c0_1, %c0_2] : memref<8x256xf32, #tpu.memory_space<vmem>>, vector<8x256xf32>
    tpu.vector_store %arg2[%c0_1, %c0_2], %0 {strides = array<i32>} : memref<8x256xf32, #tpu.memory_space<vmem>>, vector<8x256xf32>,
    return
  }
  func.func @transform_0(%arg0: i32) -> (i32, i32) {
    %c0_i32 = arith.constant 0 : i32
    %c0_i32_0 = arith.constant 0 : i32
    return %arg0, %c0_i32 : i32, i32
  }
  func.func @transform_1(%arg0: i32) -> (i32, i32) {
    %c0_i32 = arith.constant 0 : i32
    %c0_i32_0 = arith.constant 0 : i32
    return %arg0, %c0_i32 : i32, i32
  }
}

</mosaic_0001>

<bundles_post_ra>
// kernel: tpu_custom_call.1
= control target key start
LH: loop header
LB: loop body
LE: loop exit
PB: predicated region body
PF: predicated region fallthrough
CT: control target
= control target key end

     0   :  { %6 = vsyncpa [#allocation3], 0  ;;  %s126_s0 = inlined_call_operand.hbm [shape: f32[8,256], index: 0, kind: input, shape index: {}]   ;;  %s127_s1 = inlined_call_operand.hbm [shape: f32[8,256], index: 1, kind: output, shape index: {}]  }
   0x1   :  { %7 = vsyncpa [#allocation4], 0  ;;  %s90_s6 = smov [#allocation2]   ;;  %s42_s10 = scalar_lea.hbm %s126_s0, 256 }
   0x2   :  { %s14_s7 = sshll.u32 %s90_s6, 4  ;;  %p43_p0 = scmp.ne.s32.totalorder %s126_s0, %s42_s10  ;;  %s15_s7 = int_to_ptr.vmem [resolvable:$true] %s14_s7 }
   0x3   :  { %p46_p1 = scmp.lt.u32.totalorder %s42_s10, %s126_s0 }
   0x5   :  { %p48_p2 = pnand %p46_p1, %p43_p0 }
   0x7   :  { %51 = shalt.err (!%p48_p2)
}
   0x8   :  { %s52_s15 = scalar_lea.vmem %s15_s7, 256  ;;  %p57_p4 = scmp.lt.s32.totalorder %s15_s7, %s15_s7 }
   0x9   :  { %p53_p3 = scmp.ne.s32.totalorder %s15_s7, %s52_s15  ;;  %p58_p5 = scmp.lt.s32.totalorder %s52_s15, %s52_s15 }
   0xb   :  { %p59_p6 = por %p58_p5, %p57_p4 }
   0xd   :  { %p60_p7 = pnand %p59_p6, %p53_p3 }
   0xf   :  { %63 = shalt.err (!%p60_p7)
}
  0x10   :  { %17 = dma.hbm_to_vmem [thread:$0]  %s126_s0, 256, %s15_s7, [#allocation3]  }
  0x11   :  { %86 = dma.done.wait [#allocation3], 256  }
  0x12   :  { %87 = vsyncadd [#allocation3], 4294967040  ;;  %s91_s18 = smov [#allocation5]   ;;  %v21_v0 = vld [vmem:[#allocation2] sm:$0xff]  ;;  %v22_v1 = vld [vmem:[#allocation2 + $0x8] sm:$0xff] }
  0x13   :  { %s31_s19 = sshll.u32 %s91_s18, 4  ;;  %23 = vst [vmem:[#allocation5] sm:$0xff] %v21_v0  ;;  %24 = vst [vmem:[#allocation5 + $0x8] sm:$0xff] %v22_v1  ;;  %s32_s19 = int_to_ptr.vmem [resolvable:$true] %s31_s19 }
  0x14   :  { %s64_s20 = scalar_lea.vmem %s32_s19, 256  ;;  %p69_p9 = scmp.lt.s32.totalorder %s32_s19, %s32_s19 }
  0x15   :  { %p65_p8 = scmp.ne.s32.totalorder %s32_s19, %s64_s20  ;;  %p70_p10 = scmp.lt.s32.totalorder %s64_s20, %s64_s20 }
  0x17   :  { %p71_p11 = por %p70_p10, %p69_p9 }
  0x19   :  { %p72_p12 = pnand %p71_p11, %p65_p8 }
  0x1b   :  { %75 = shalt.err (!%p72_p12)
}
  0x1c   :  { %s76_s0 = scalar_lea.hbm %s127_s1, 256 }
  0x1d   :  { %p77_p13 = scmp.ne.s32.totalorder %s127_s1, %s76_s0  ;;  %p80_p0 = scmp.lt.u32.totalorder %s76_s0, %s127_s1 }
  0x1f   :  { %p82_p1 = pnand %p80_p0, %p77_p13 }
  0x21   :  { %85 = shalt.err (!%p82_p1)
}
  0x22   :  { %34 = dma.vmem_to_hbm [thread:$0]  %s32_s19, 256, %s127_s1, [#allocation4]  }
  0x23   :  { %88 = dma.done.wait [#allocation4], 256  }
  0x24   :  { %89 = vsyncadd [#allocation4], 4294967040 }
  0x25   :  { %38 = vsyncpa [#allocation3], 1 }
  0x26   :  { %39 = vsyncpa [#allocation4], 1 }

</bundles_post_ra>
